<compile_context>
chip_gen: v5e
topology: v5e:2x2
jax: 0.10.0
libtpu: 0.0.40
codegen_flags: <defaults>
</compile_context>

<pallas_src>
import functools
import math

import jax
import jax.numpy as jnp
import numpy as np
from jax.experimental import pallas as pl
from jax.experimental.pallas import tpu as pltpu


def _round_up(v, m):
    return ((v + m - 1) // m) * m


def _evo_kernel(best_ref, x_ref, w_ref, b_ref, sel_ref, out_ref, mom_ref, *,
                real_batch):
    """One batch tile per grid step.

    best_ref: SMEM (1,) int32          scalar-prefetched current_best index
    x_ref:    (tb, D_in)      bf16     batch tile
    w_ref:    (D_in, C*H_pad) bf16     candidate-major lane-concatenated weights
    b_ref:    (1, C*H_pad)    f32      biases (zero in padded lanes)
    sel_ref:  (C*H_pad, C_pad) f32     constant group-selection one-hot
    out_ref:  (tb, H_pad)     f32      output tile of the current-best candidate
    mom_ref:  (1, 2, C_pad)   f32      per-block [sum; sum-of-squares] per candidate
    """
    tb, h_pad = out_ref.shape
    ch_pad = w_ref.shape[-1]
    num_candidates = ch_pad // h_pad

    # One fused Linear + ReLU over ALL candidates (bf16 MXU, f32 accumulation).
    x = x_ref[...]                                            # (tb, D_in) bf16
    y = jnp.dot(x, w_ref[...], preferred_element_type=jnp.float32)
    y = jnp.maximum(y + b_ref[...], 0.0)                      # (tb, C*H_pad) f32

    # ---- output of the current best candidate --------------------------------
    # H_pad is a multiple of 128, so each static slice is a cheap 128-aligned
    # lane slice; the (C-1)-deep where chain is a handful of (tb, 128) selects.
    best = best_ref[0]
    out = y[:, 0:h_pad]
    for c in range(1, num_candidates):
        out = jnp.where(best == c, y[:, c * h_pad:(c + 1) * h_pad], out)
    out_ref[...] = out.astype(out_ref.dtype)

    # ---- per-block moments (padded batch rows masked to zero) ----------------
    row = jax.lax.broadcasted_iota(jnp.int32, (tb, 1), 0)
    valid = (pl.program_id(0) * tb + row) < real_batch        # static real_batch
    ym = jnp.where(valid, y, 0.0)
    s = jnp.sum(ym, axis=0, keepdims=True)                    # (1, C*H_pad)
    ss = jnp.sum(ym * ym, axis=0, keepdims=True)              # (1, C*H_pad)
    # Group each candidate's H lanes with a tiny selection matmul (no relayout).
    sel = sel_ref[...]
    s_c = jnp.dot(s, sel, preferred_element_type=jnp.float32)   # (1, C_pad)
    ss_c = jnp.dot(ss, sel, preferred_element_type=jnp.float32)  # (1, C_pad)
    mom_ref[...] = jnp.concatenate([s_c, ss_c], axis=0)[None]   # (1, 2, C_pad)


def prepare_params(weights, biases):
    """One-time relayout of the population parameters (do NOT call per step).

    weights: (C, D_in, H) f32   (transposed vs. PyTorch: column i = W[i].T)
    biases:  (C, 1, H)    f32
    """
    num_candidates, input_dim, hidden_dim = weights.shape
    h_pad = _round_up(hidden_dim, 128)
    c_pad = _round_up(num_candidates, 128)
    ch_pad = num_candidates * h_pad

    # Zero-pad each candidate's H lanes to H_pad, then lane-concatenate.
    w_p = jnp.zeros((num_candidates, input_dim, h_pad), jnp.float32)
    w_p = w_p.at[:, :, :hidden_dim].set(weights)
    w_cat = jnp.transpose(w_p, (1, 0, 2)).reshape(input_dim, ch_pad)
    w_cat = w_cat.astype(jnp.bfloat16)                         # halve DMA bytes

    b_p = jnp.zeros((num_candidates, 1, h_pad), jnp.float32)
    b_p = b_p.at[:, :, :hidden_dim].set(biases)
    b_cat = b_p.reshape(1, ch_pad)

    # Constant group-selection one-hot (lane -> candidate). Padded lanes give
    # exact zeros after ReLU, so including them in the group sums is harmless.
    lane = np.arange(ch_pad)[:, None]
    cand = np.arange(c_pad)[None, :]
    sel = jnp.asarray((lane // h_pad) == cand, jnp.float32)

    return {
        "w_cat": w_cat, "b_cat": b_cat, "sel": sel,
        "input_dim": input_dim, "hidden_dim": hidden_dim,
        "num_candidates": num_candidates,
        "h_pad": h_pad, "c_pad": c_pad, "ch_pad": ch_pad,
    }


def evolutionary_layer_forward(x, params, current_best=0, *, batch_tile=256):
    """x: (B, D_in) f32; params: output of prepare_params.

    Returns (output, fitness):
      output  = ReLU(x @ weights[current_best] + biases[current_best])   (B, H)
      fitness = per-candidate unbiased std - |mean| of each candidate's output.
    """
    batch, input_dim = x.shape
    assert input_dim == params["input_dim"]
    hidden_dim = params["hidden_dim"]
    num_candidates = params["num_candidates"]
    h_pad, c_pad, ch_pad = params["h_pad"], params["c_pad"], params["ch_pad"]

    # Batch tiling ("parallel" grid axis: megacore on v7x + pipelined DMA).
    tb = min(batch, batch_tile)
    nb = -(-batch // tb)
    b_pad = nb * tb

    xb = x.astype(jnp.bfloat16)
    if b_pad != batch:
        xb = jnp.zeros((b_pad, input_dim), jnp.bfloat16).at[:batch].set(xb)

    best = jnp.asarray([current_best], dtype=jnp.int32)
    kernel = functools.partial(_evo_kernel, real_batch=batch)

    # VMEM budget: double-buffered blocks + the y intermediate, with margin.
    blk_bytes = (tb * input_dim * 2 + input_dim * ch_pad * 2 + ch_pad * 4
                 + ch_pad * c_pad * 4 + tb * h_pad * 4 + 2 * c_pad * 4)
    vmem_limit = int(min(48 * 1024 * 1024,
                         2 * blk_bytes + tb * ch_pad * 4 + (4 << 20)))

    grid_spec = pltpu.PrefetchScalarGridSpec(
        num_scalar_prefetch=1,
        grid=(nb,),
        in_specs=[
            pl.BlockSpec((tb, input_dim), lambda i, best: (i, 0)),
            pl.BlockSpec((input_dim, ch_pad), lambda i, best: (0, 0)),
            pl.BlockSpec((1, ch_pad), lambda i, best: (0, 0)),
            pl.BlockSpec((ch_pad, c_pad), lambda i, best: (0, 0)),
        ],
        out_specs=[
            pl.BlockSpec((tb, h_pad), lambda i, best: (i, 0)),
            pl.BlockSpec((1, 2, c_pad), lambda i, best: (i, 0, 0)),
        ],
    )

    out_p, mom = pl.pallas_call(
        kernel,
        out_shape=(
            jax.ShapeDtypeStruct((b_pad, h_pad), jnp.float32),
            jax.ShapeDtypeStruct((nb, 2, c_pad), jnp.float32),
        ),
        grid_spec=grid_spec,
        compiler_params=pltpu.CompilerParams(
            dimension_semantics=("parallel",),
            vmem_limit_bytes=vmem_limit,
        ),
    )(best, xb, params["w_cat"], params["b_cat"], params["sel"])

    # Finalize fitness from per-block moments (tiny nb x C reduction).
    # TODO(synk): one-pass variance can lose precision if |mean| >> std; switch
    # to a mean-shifted formulation if candidate fitness values become close.
    n = batch * hidden_dim
    denom = max(n - 1, 1)
    s = jnp.sum(mom[:, 0, :num_candidates], axis=0)
    ss = jnp.sum(mom[:, 1, :num_candidates], axis=0)
    mean = s / n
    var = jnp.maximum((ss - s * s / n) / denom, 0.0)
    fitness = jnp.sqrt(var) - jnp.abs(mean)

    return out_p[:batch, :hidden_dim], fitness


def init_population_params(key, input_dim, hidden_dim, num_candidates):
    """Deterministic xavier_uniform(gain=scale) weights and uniform biases,
    matching EvolutionaryLayer.__init__ (weights stored transposed vs. PyTorch,
    i.e. (C, D_in, H))."""
    w_list, b_list = [], []
    for i in range(num_candidates):
        key, kw, kb = jax.random.split(key, 3)
        scale = 1.0 + (i - num_candidates // 2) * 0.2
        bound = scale * math.sqrt(6.0 / (input_dim + hidden_dim))
        w = jax.random.uniform(kw, (input_dim, hidden_dim), jnp.float32,
                               -bound, bound)
        b = jax.random.uniform(kb, (1, hidden_dim), jnp.float32,
                               -0.1 * scale, 0.1 * scale)
        w_list.append(w)
        b_list.append(b)
    return jnp.stack(w_list, axis=0), jnp.stack(b_list, axis=0)


if __name__ == "__main__":
    batch, input_dim, hidden_dim, num_candidates = 8, 32, 32, 5

    key = jax.random.PRNGKey(0)
    key, kx = jax.random.split(key)
    x = jax.random.normal(kx, (batch, input_dim), jnp.float32)
    weights, biases = init_population_params(key, input_dim, hidden_dim,
                                             num_candidates)

    # One-time layout/precision prep (persisted across forward calls).
    params = prepare_params(weights, biases)

    # Pure-JAX reference with the same bf16 matmul inputs / f32 accumulation.
    xb = x.astype(jnp.bfloat16)
    ref_outs, ref_fit = [], []
    for i in range(num_candidates):
        y = jnp.maximum(
            jnp.dot(xb, weights[i].astype(jnp.bfloat16),
                    preferred_element_type=jnp.float32) + biases[i], 0.0)
        ref_outs.append(y)
        ref_fit.append(jnp.std(y, ddof=1) - jnp.abs(jnp.mean(y)))
    ref_fit = jnp.stack(ref_fit)

    # Exercise the dynamic current_best path (no recompilation between calls).
    for best in (0, 3):
        out, fitness = evolutionary_layer_forward(x, params, current_best=best)
        out = jax.block_until_ready(out)
        fitness = jax.block_until_ready(fitness)

        np.testing.assert_allclose(np.asarray(out), np.asarray(ref_outs[best]),
                                   rtol=5e-3, atol=5e-3)
        np.testing.assert_allclose(np.asarray(fitness), np.asarray(ref_fit),
                                   rtol=1e-2, atol=1e-3)

    print("KERNEL_OK")
</pallas_src>

<mosaic_0001>
module attributes {stable_mosaic.version = 11 : i64} {
  func.func @_evo_kernel(%arg0: i32, %arg1: memref<1xi32, #tpu.memory_space<smem>>, %arg2: memref<8x32xbf16, #tpu.memory_space<vmem>>, %arg3: memref<32x640xbf16, #tpu.memory_space<vmem>>, %arg4: memref<1x640xf32, #tpu.memory_space<vmem>>, %arg5: memref<640x128xf32, #tpu.memory_space<vmem>>, %arg6: memref<8x128xf32, #tpu.memory_space<vmem>>, %arg7: memref<1x2x128xf32, #tpu.memory_space<vmem>>) attributes {dimension_semantics = [#tpu.dimension_semantics<parallel>], iteration_bounds = array<i64: 1>, scalar_prefetch = 1 : i64, scratch_operands = 0 : i64, tpu.core_type = #tpu.core_type<tc>, window_params = [{transform_indices = @transform_0, window_bounds = array<i64: 8, 32>}, {pipeline_mode = #tpu.pipeline_mode<synchronous>, transform_indices = @transform_1, window_bounds = array<i64: 32, 640>}, {pipeline_mode = #tpu.pipeline_mode<synchronous>, transform_indices = @transform_2, window_bounds = array<i64: 1, 640>}, {pipeline_mode = #tpu.pipeline_mode<synchronous>, transform_indices = @transform_3, window_bounds = array<i64: 640, 128>}, {transform_indices = @transform_4, window_bounds = array<i64: 8, 128>}, {transform_indices = @transform_5, window_bounds = array<i64: 1, 2, 128>}]} {
    %c0 = arith.constant 0 : index
    %c0_0 = arith.constant 0 : index
    %0 = vector.load %arg2[%c0, %c0_0] : memref<8x32xbf16, #tpu.memory_space<vmem>>, vector<8x32xbf16>
    %c0_1 = arith.constant 0 : index
    %c0_2 = arith.constant 0 : index
    %1 = vector.load %arg3[%c0_1, %c0_2] : memref<32x640xbf16, #tpu.memory_space<vmem>>, vector<32x640xbf16>
    %cst = arith.constant dense<0.000000e+00> : vector<8x640xf32>
    %2 = tpu.matmul %0, %1, %cst {dimension_numbers = #tpu.dot_dimension_numbers<[1], [0], [0], [1], [0, 0, 1, 1], [], []>} : vector<8x32xbf16>, vector<32x640xbf16>, vector<8x640xf32> -> vector<8x640xf32>
    %c0_3 = arith.constant 0 : index
    %c0_4 = arith.constant 0 : index
    %3 = vector.load %arg4[%c0_3, %c0_4] : memref<1x640xf32, #tpu.memory_space<vmem>>, vector<1x640xf32>
    %4 = vector.broadcast %3 : vector<1x640xf32> to vector<8x640xf32>
    %5 = arith.addf %2, %4 : vector<8x640xf32>
    %cst_5 = arith.constant 0.000000e+00 : f32
    %6 = vector.broadcast %cst_5 : f32 to vector<8x640xf32>
    %7 = arith.maximumf %5, %6 : vector<8x640xf32>
    %c0_6 = arith.constant 0 : index
    %8 = memref.load %arg1[%c0_6] : memref<1xi32, #tpu.memory_space<smem>>
    %9 = vector.extract_strided_slice %7 {offsets = [0, 0], sizes = [8, 128], strides = [1, 1]} : vector<8x640xf32> to vector<8x128xf32>
    %c1_i32 = arith.constant 1 : i32
    %10 = arith.cmpi eq, %8, %c1_i32 : i32
    %11 = vector.extract_strided_slice %7 {offsets = [0, 128], sizes = [8, 128], strides = [1, 1]} : vector<8x640xf32> to vector<8x128xf32>
    %12 = arith.select %10, %11, %9 : vector<8x128xf32>
    %c2_i32 = arith.constant 2 : i32
    %13 = arith.cmpi eq, %8, %c2_i32 : i32
    %14 = vector.extract_strided_slice %7 {offsets = [0, 256], sizes = [8, 128], strides = [1, 1]} : vector<8x640xf32> to vector<8x128xf32>
    %15 = arith.select %13, %14, %12 : vector<8x128xf32>
    %c3_i32 = arith.constant 3 : i32
    %16 = arith.cmpi eq, %8, %c3_i32 : i32
    %17 = vector.extract_strided_slice %7 {offsets = [0, 384], sizes = [8, 128], strides = [1, 1]} : vector<8x640xf32> to vector<8x128xf32>
    %18 = arith.select %16, %17, %15 : vector<8x128xf32>
    %c4_i32 = arith.constant 4 : i32
    %19 = arith.cmpi eq, %8, %c4_i32 : i32
    %20 = vector.extract_strided_slice %7 {offsets = [0, 512], sizes = [8, 128], strides = [1, 1]} : vector<8x640xf32> to vector<8x128xf32>
    %21 = arith.select %19, %20, %18 : vector<8x128xf32>
    %c0_7 = arith.constant 0 : index
    %c0_8 = arith.constant 0 : index
    %22 = vector.load %arg6[%c0_7, %c0_8] : memref<8x128xf32, #tpu.memory_space<vmem>>, vector<8x128xf32>
    tpu.vector_store %arg6[%c0_7, %c0_8], %21 {strides = array<i32>} : memref<8x128xf32, #tpu.memory_space<vmem>>, vector<8x128xf32>,
    %23 = tpu.iota {dimensions = array<i32: 0>} : vector<8x1xi32>
    %c8_i32 = arith.constant 8 : i32
    %24 = arith.muli %arg0, %c8_i32 : i32
    %25 = vector.broadcast %24 : i32 to vector<8x1xi32>
    %26 = arith.addi %25, %23 : vector<8x1xi32>
    %c8_i32_9 = arith.constant 8 : i32
    %27 = vector.broadcast %c8_i32_9 : i32 to vector<8x1xi32>
    %28 = arith.cmpi slt, %26, %27 : vector<8x1xi32>
    %cst_10 = arith.constant 0.000000e+00 : f32
    %29 = vector.shape_cast %28 : vector<8x1xi1> to vector<8x1xi1>
    %30 = vector.broadcast %29 : vector<8x1xi1> to vector<8x640xi1>
    %31 = vector.broadcast %cst_10 : f32 to vector<8x640xf32>
    %32 = arith.select %30, %7, %31 : vector<8x640xi1>, vector<8x640xf32>
    %cst_11 = arith.constant dense<0.000000e+00> : vector<640xf32>
    %33 = vector.multi_reduction <add>, %32, %cst_11 [0] : vector<8x640xf32> to vector<640xf32>
    %34 = vector.shape_cast %33 : vector<640xf32> to vector<1x640xf32>
    %35 = arith.mulf %32, %32 : vector<8x640xf32>
    %cst_12 = arith.constant dense<0.000000e+00> : vector<640xf32>
    %36 = vector.multi_reduction <add>, %35, %cst_12 [0] : vector<8x640xf32> to vector<640xf32>
    %37 = vector.shape_cast %36 : vector<640xf32> to vector<1x640xf32>
    %c0_13 = arith.constant 0 : index
    %c0_14 = arith.constant 0 : index
    %38 = vector.load %arg5[%c0_13, %c0_14] : memref<640x128xf32, #tpu.memory_space<vmem>>, vector<640x128xf32>
    %cst_15 = arith.constant dense<0.000000e+00> : vector<1x128xf32>
    %39 = tpu.matmul %34, %38, %cst_15 {dimension_numbers = #tpu.dot_dimension_numbers<[1], [0], [0], [1], [0, 0, 1, 1], [], []>} : vector<1x640xf32>, vector<640x128xf32>, vector<1x128xf32> -> vector<1x128xf32>
    %cst_16 = arith.constant dense<0.000000e+00> : vector<1x128xf32>
    %40 = tpu.matmul %37, %38, %cst_16 {dimension_numbers = #tpu.dot_dimension_numbers<[1], [0], [0], [1], [0, 0, 1, 1], [], []>} : vector<1x640xf32>, vector<640x128xf32>, vector<1x128xf32> -> vector<1x128xf32>
    %41 = tpu.concatenate %39, %40 in 0 : vector<1x128xf32>, vector<1x128xf32> -> vector<2x128xf32>
    %42 = vector.shape_cast %41 : vector<2x128xf32> to vector<1x2x128xf32>
    %c0_17 = arith.constant 0 : index
    %c0_18 = arith.constant 0 : index
    %c0_19 = arith.constant 0 : index
    %43 = vector.load %arg7[%c0_17, %c0_18, %c0_19] : memref<1x2x128xf32, #tpu.memory_space<vmem>>, vector<1x2x128xf32>
    tpu.vector_store %arg7[%c0_17, %c0_18, %c0_19], %42 {strides = array<i32>} : memref<1x2x128xf32, #tpu.memory_space<vmem>>, vector<1x2x128xf32>,
    return
  }
  func.func @transform_0(%arg0: i32, %arg1: memref<1xi32, #tpu.memory_space<smem>>) -> (i32, i32) {
    %c0_i32 = arith.constant 0 : i32
    %c0_i32_0 = arith.constant 0 : i32
    return %arg0, %c0_i32 : i32, i32
  }
  func.func @transform_1(%arg0: i32, %arg1: memref<1xi32, #tpu.memory_space<smem>>) -> (i32, i32) {
    %c0_i32 = arith.constant 0 : i32
    %c0_i32_0 = arith.constant 0 : i32
    %c0_i32_1 = arith.constant 0 : i32
    return %c0_i32, %c0_i32_0 : i32, i32
  }
  func.func @transform_2(%arg0: i32, %arg1: memref<1xi32, #tpu.memory_space<smem>>) -> (i32, i32) {
    %c0_i32 = arith.constant 0 : i32
    %c0_i32_0 = arith.constant 0 : i32
    %c0_i32_1 = arith.constant 0 : i32
    return %c0_i32, %c0_i32_0 : i32, i32
  }
  func.func @transform_3(%arg0: i32, %arg1: memref<1xi32, #tpu.memory_space<smem>>) -> (i32, i32) {
    %c0_i32 = arith.constant 0 : i32
    %c0_i32_0 = arith.constant 0 : i32
    %c0_i32_1 = arith.constant 0 : i32
    return %c0_i32, %c0_i32_0 : i32, i32
  }
  func.func @transform_4(%arg0: i32, %arg1: memref<1xi32, #tpu.memory_space<smem>>) -> (i32, i32) {
    %c0_i32 = arith.constant 0 : i32
    %c0_i32_0 = arith.constant 0 : i32
    return %arg0, %c0_i32 : i32, i32
  }
  func.func @transform_5(%arg0: i32, %arg1: memref<1xi32, #tpu.memory_space<smem>>) -> (i32, i32, i32) {
    %c0_i32 = arith.constant 0 : i32
    %c0_i32_0 = arith.constant 0 : i32
    %c0_i32_1 = arith.constant 0 : i32
    return %arg0, %c0_i32, %c0_i32_0 : i32, i32, i32
  }
}

</mosaic_0001>

<bundles_post_ra>
// kernel: tpu_custom_call.1
= control target key start
LH: loop header
LB: loop body
LE: loop exit
PB: predicated region body
PF: predicated region fallthrough
CT: control target
= control target key end

     0   :  { %13 = vsyncpa [#allocation5], 0  ;;  %s1326_s0 = inlined_call_operand.<no memory space> [shape: s32[1], index: 0, kind: input, shape index: {}]   ;;  %s1327_s1 = inlined_call_operand.hbm [shape: bf16[8,32], index: 1, kind: input, shape index: {}]   ;;  %s1328_s2 = inlined_call_operand.hbm [shape: bf16[32,640], index: 2, kind: input, shape index: {}]   ;;  %s1329_s3 = inlined_call_operand.hbm [shape: f32[1,640], index: 3, kind: input, shape index: {}]   ;;  %s1330_s4 = inlined_call_operand.hbm [shape: f32[640,128], index: 4, kind: input, shape index: {}]   ;;  %s1331_s5 = inlined_call_operand.hbm [shape: f32[8,128], index: 5, kind: output, shape index: {0}]   ;;  %s1332_s6 = inlined_call_operand.hbm [shape: f32[1,2,128], index: 6, kind: output, shape index: {1}]  }
   0x1   :  { %14 = vsyncpa [#allocation8], 0 }
   0x2   :  { %15 = vsyncpa [#allocation11], 0 }
   0x3   :  { %16 = vsyncpa [#allocation6], 0  ;;  %s33_s23 = sshll.u32 %s1328_s2, 4  ;;  %s34_s23 = int_to_ptr.hbm [resolvable:$true] %s33_s23 }
   0x4   :  { %17 = vsyncpa [#allocation14], 0  ;;  %s874_s24 = smov [#allocation7]   ;;  %s23_s28 = sshll.u32 %s1327_s1, 4  ;;  %s24_s28 = int_to_ptr.hbm [resolvable:$true] %s23_s28 }
   0x5   :  { %s35_s25 = sshll.u32 %s874_s24, 4  ;;  %s875_s29 = smov 320   ;;  %s36_s25 = int_to_ptr.vmem [resolvable:$true] %s35_s25 }
   0x6   :  { %s876_s30 = smov 20   ;;  %s877_s7 = smov [#allocation4]  }
   0x7   :  { %41 = dma.hbm_to_vmem [thread:$0]  %s34_s23, 1280, %s36_s25, [#allocation8], %s875_s29, %s875_s29, %s876_s30  }
   0x8   :  { %s25_s8 = sshll.u32 %s877_s7, 4  ;;  %s47_s11 = sshll.u32 %s1329_s3, 4  ;;  %s26_s8 = int_to_ptr.vmem [resolvable:$true] %s25_s8  ;;  %s48_s11 = int_to_ptr.hbm [resolvable:$true] %s47_s11 }
   0x9   :  { %28 = dma.hbm_to_vmem [thread:$0]  %s24_s28, 64, %s26_s8, [#allocation5]  }
   0xa   :  { %s57_s13 = sshll.u32 %s1330_s4, 4  ;;  %s878_s14 = smov [#allocation9]   ;;  %s58_s13 = int_to_ptr.hbm [resolvable:$true] %s57_s13 }
   0xb   :  { %s49_s15 = sshll.u32 %s878_s14, 4  ;;  %s879_s1 = smov [#allocation10]   ;;  %s50_s15 = int_to_ptr.vmem [resolvable:$true] %s49_s15 }
   0xc   :  { %52 = dma.hbm_to_vmem [thread:$0]  %s48_s11, 80, %s50_s15, [#allocation8]  }
   0xd   :  { %s59_s16 = sshll.u32 %s879_s1, 4  ;;  %s880_s17 = smov 128   ;;  %s60_s16 = int_to_ptr.vmem [resolvable:$true] %s59_s16 }
   0xe   :  { %s881_s18 = smov 8  }
   0xf   :  { %65 = dma.hbm_to_vmem [thread:$0]  %s58_s13, 10240, %s60_s16, [#allocation11], %s880_s17, %s880_s17, %s881_s18  }
  0x10   :  { %864 = dma.done.wait [#allocation5], 64  }
  0x11   :  { %865 = vsyncadd [#allocation5], 4294967232 }
  0x12   :  { %866 = dma.done.wait [#allocation8], 1360  }
  0x13   :  { %867 = vsyncadd [#allocation8], 4294965936 }
  0x14   :  { %868 = dma.done.wait [#allocation11], 10240  }
  0x15   :  { %869 = vsyncadd [#allocation11], 4294957056  ;;  %v677_v0 = vld [vmem:[#allocation7 + $0x28] sm:$0xf]  ;;  %v707_v1 = vld [vmem:[#allocation7 + $0x38] sm:$0xf0] }
  0x16   :  { %v705_v2 = vld [vmem:[#allocation7 + $0x2c] sm:$0xf]  ;;  %v678_v3 = vor.u32 %v707_v1, %v677_v0  ;;  %v679_v4 = vld [vmem:[#allocation7 + $0x3c] sm:$0xf0]  ;;  %v685_v5 = vld [vmem:[#allocation7 + $0x30] sm:$0xf] }
  0x17   :  { %v708_v6 = vld [vmem:[#allocation7 + $0x40] sm:$0xf0]  ;;  %v682_v7 = vor.u32 %v705_v2, %v679_v4  ;;  %v657_v9 = vld [vmem:[#allocation7] sm:$0xf]  ;;  %v702_v10 = vld [vmem:[#allocation7 + $0x10] sm:$0xf0] }
  0x18   :  { %v686_v8 = vor.u32 %v708_v6, %v685_v5  ;;  %v700_v11 = vld [vmem:[#allocation7 + $0x4] sm:$0xf]  ;;  %170 = vmatpush.bf16.msra.mxu0 %v678_v3  ;;  %v658_v12 = vor.u32 %v702_v10, %v657_v9  ;;  %v659_v13 = vld [vmem:[#allocation7 + $0x14] sm:$0xf0]  ;;  %v665_v14 = vld [vmem:[#allocation7 + $0x8] sm:$0xf] }
  0x19   :  { %v703_v15 = vld [vmem:[#allocation7 + $0x18] sm:$0xf0]  ;;  %183 = vmatpush.bf16.msra.mxu3 %v682_v7  ;;  %v662_v16 = vor.u32 %v700_v11, %v659_v13  ;;  %v706_v18 = vld [vmem:[#allocation7 + $0x34] sm:$0xf]  ;;  %v687_v19 = vld [vmem:[#allocation7 + $0x44] sm:$0xf0] }
  0x1a   :  { %196 = vmatpush.bf16.msra.mxu2 %v686_v8  ;;  %v666_v17 = vor.u32 %v703_v15, %v665_v14  ;;  %v690_v20 = vor.u32 %v706_v18, %v687_v19  ;;  %v701_v21 = vld [vmem:[#allocation7 + $0xc] sm:$0xf]  ;;  %v667_v22 = vld [vmem:[#allocation7 + $0x1c] sm:$0xf0]  ;;  %v693_v23 = vld [vmem:[#allocation7 + $0x38] sm:$0xf] }
  0x1b   :  { %v709_v24 = vld [vmem:[#allocation7 + $0x48] sm:$0xf0]  ;;  %v673_v25 = vld [vmem:[#allocation7 + $0x10] sm:$0xf]  ;;  %v704_v26 = vld [vmem:[#allocation7 + $0x20] sm:$0xf0]  ;;  %v670_v30 = vor.u32 %v701_v21, %v667_v22 }
  0x1c   :  { %171 = vmatpush.bf16.msra.mxu0 %v658_v12  ;;  %v931_v27 = vld [vmem:[#allocation4] sm:$0xf]  ;;  %vm160_vm0 = vcmask 261120   ;;  %v694_v28 = vor.u32 %v709_v24, %v693_v23  ;;  %v933_v29 = vld [vmem:[#allocation10 + $0x78] sm:$0xff]  ;;  %v674_v31 = vor.u32 %v704_v26, %v673_v25  ;;  %v935_v32 = vld [vmem:[#allocation10 + $0x70] sm:$0xff]  ;;  %p235_p0 = scmp.eq.s32.totalorder %s1326_s0, 1 }
  0x1d   :  { %184 = vmatpush.bf16.msra.mxu3 %v662_v16  ;;  %v937_v33 = vld [vmem:[#allocation10 + $0xf8] sm:$0xff]  ;;  %414 = vmatpush.msra.mxu1 %v933_v29  ;;  %v946_v34 = vld [vmem:[#allocation10 + $0x68] sm:$0xff]  ;;  %v948_v35 = vld [vmem:[#allocation10 + $0xf0] sm:$0xff]  ;;  %p240_p1 = scmp.eq.s32.totalorder %s1326_s0, 2  ;;  %p245_p2 = scmp.eq.s32.totalorder %s1326_s0, 3  ;;  %vm617_vm5 = vcmask 1040384  }
  0x1e   :  { %197 = vmatpush.bf16.msra.mxu2 %v666_v17  ;;  %v952_v36 = vld [vmem:[#allocation10 + $0x178] sm:$0xff]  ;;  %v954_v37 = vld [vmem:[#allocation10 + $0x60] sm:$0xff]  ;;  %v956_v38 = vld [vmem:[#allocation10 + $0xe8] sm:$0xff]  ;;  %s1231_s19 = scalar_select %p235_p0, 1, 0 }
  0x1f   :  { %695 = vmatmul.msk.bf16.vlgmr.msra.gmra.mxu0 %vm160_vm0, %v931_v27  ;;  %415 = vmatpush.msra.mxu1 %v935_v32  ;;  %v960_v39 = vld [vmem:[#allocation10 + $0x170] sm:$0xff]  ;;  %v962_v40 = vld [vmem:[#allocation10 + $0x58] sm:$0xff]  ;;  %v964_v41 = vld [vmem:[#allocation10 + $0xe0] sm:$0xff]  ;;  %p250_p3 = scmp.eq.s32.totalorder %s1326_s0, 4  ;;  %s627_s2 = sshll.u32 %s1331_s5, 4  ;;  %s628_s2 = int_to_ptr.hbm [resolvable:$true] %s627_s2 }
  0x20   :  { %222 = vmatpush.bf16.msrb.mxu0 %v694_v28  ;;  %696 = vmatmul.msk.bf16.vlgmr.msra.gmra.mxu3 %vm160_vm0, %v931_v27  ;;  %v969_v42 = vld [vmem:[#allocation10 + $0x168] sm:$0xff]  ;;  %v971_v43 = vld [vmem:[#allocation10 + $0x50] sm:$0xff]  ;;  %v973_v44 = vld [vmem:[#allocation10 + $0xd8] sm:$0xff]  ;;  %s241_s28 = scalar_select %p240_p1, 1, 0 }
  0x21   :  { %209 = vmatpush.bf16.msrb.mxu3 %v690_v20  ;;  %697 = vmatmul.msk.bf16.vlgmr.msra.gmra.mxu2 %vm160_vm0, %v931_v27  ;;  %v978_v45 = vld [vmem:[#allocation10 + $0x160] sm:$0xff]  ;;  %v980_v46 = vld [vmem:[#allocation10 + $0x48] sm:$0xff]  ;;  %v982_v47 = vld [vmem:[#allocation10 + $0xd0] sm:$0xff]  ;;  %s1261_s7 = scalar_select %p245_p2, 1, 0 }
  0x22   :  { %434 = vmatpush.msrb.mxu2 %v937_v33  ;;  %416 = vmatpush.msra.mxu1 %v946_v34  ;;  %v985_v48 = vld [vmem:[#allocation10 + $0x1f8] sm:$0xff]  ;;  %v991_v50 = vld [vmem:[#allocation10 + $0x40] sm:$0xff]  ;;  %v993_v51 = vld [vmem:[#allocation10 + $0xc8] sm:$0xff]  ;;  %s1267_s10 = scalar_select %p250_p3, 1, 0 }
  0x23   :  { %v989_v49 = vld [vmem:[#allocation10 + $0x158] sm:$0xff]  ;;  %v997_v52 = vld [vmem:[#allocation10 + $0x1f0] sm:$0xff]  ;;  %v1003_v54 = vld [vmem:[#allocation10 + $0x1e8] sm:$0xff]  ;;  %s882_s12 = smov [#allocation12]   ;;  %s883_s5 = smov [#allocation13]  }
  0x24   :  { %223 = vmatpush.bf16.msrb.mxu0 %v674_v31  ;;  %435 = vmatpush.msrb.mxu2 %v948_v35  ;;  %v1001_v53 = vld [vmem:[#allocation10 + $0x150] sm:$0xff]  ;;  %v1005_v55 = vld [vmem:[#allocation10 + $0x38] sm:$0xff]  ;;  %v1011_v56 = vld [vmem:[#allocation10 + $0xc0] sm:$0xff]  ;;  %s625_s13 = sshll.u32 %s882_s12, 4  ;;  %s636_s14 = sshll.u32 %s883_s5, 4  ;;  %s626_s13 = int_to_ptr.vmem [resolvable:$true] %s625_s13  ;;  %s637_s14 = int_to_ptr.vmem [resolvable:$true] %s636_s14 }
  0x25   :  { %210 = vmatpush.bf16.msrb.mxu3 %v670_v30  ;;  %417 = vmatpush.msra.mxu1 %v954_v37  ;;  %v1013_v57 = vld [vmem:[#allocation10 + $0x30] sm:$0xff]  ;;  %v1016_v58 = vld [vmem:[#allocation10 + $0x148] sm:$0xff]  ;;  %v1022_v59 = vld [vmem:[#allocation10 + $0xb8] sm:$0xff]  ;;  %s638_s16 = sshll.u32 %s1332_s6, 4  ;;  %s639_s16 = int_to_ptr.hbm [resolvable:$true] %s638_s16 }
  0x26   :  { %436 = vmatpush.msrb.mxu2 %v956_v38  ;;  %v1024_v60 = vld [vmem:[#allocation10 + $0x1e0] sm:$0xff]  ;;  %v1028_v61 = vld [vmem:[#allocation10 + $0x28] sm:$0xff]  ;;  %v1034_v63 = vld [vmem:[#allocation10 + $0xb0] sm:$0xff] }
  0x27   :  { %418 = vmatpush.msra.mxu1 %v962_v40  ;;  %v1031_v62 = vld [vmem:[#allocation10 + $0x140] sm:$0xff]  ;;  %v1037_v0 = vld [vmem:[#allocation10 + $0x1d8] sm:$0xff]  ;;  %v1046_v3 = vld [vmem:[#allocation10 + $0xa8] sm:$0xff] }
  0x28   :  { %437 = vmatpush.msrb.mxu2 %v964_v41  ;;  %474 = vmatpush.msra.mxu0 %v985_v48  ;;  %v1039_v1 = vld [vmem:[#allocation10 + $0x20] sm:$0xff]  ;;  %v1042_v2 = vld [vmem:[#allocation10 + $0x138] sm:$0xff]  ;;  %v1049_v4 = vld [vmem:[#allocation10 + $0x1d0] sm:$0xff] }
  0x29   :  { %454 = vmatpush.msra.mxu3 %v952_v36  ;;  %419 = vmatpush.msra.mxu1 %v971_v43  ;;  %v1051_v5 = vld [vmem:[#allocation10 + $0x18] sm:$0xff]  ;;  %v1054_v6 = vld [vmem:[#allocation10 + $0x130] sm:$0xff]  ;;  %v1058_v7 = vld [vmem:[#allocation10 + $0xa0] sm:$0xff] }
  0x2a   :  { %438 = vmatpush.msrb.mxu2 %v973_v44  ;;  %475 = vmatpush.msra.mxu0 %v997_v52  ;;  %v1061_v8 = vld [vmem:[#allocation10 + $0x1c8] sm:$0xff]  ;;  %v1063_v9 = vld [vmem:[#allocation10 + $0x10] sm:$0xff]  ;;  %v1070_v11 = vld [vmem:[#allocation10 + $0x98] sm:$0xff] }
  0x2b   :  { %455 = vmatpush.msra.mxu3 %v960_v39  ;;  %420 = vmatpush.msra.mxu1 %v980_v46  ;;  %v1066_v10 = vld [vmem:[#allocation10 + $0x128] sm:$0xff]  ;;  %v1073_v12 = vld [vmem:[#allocation10 + $0x1c0] sm:$0xff]  ;;  %v352_v15 = vld [vmem:[#allocation10 + $0x90] sm:$0xff] }
  0x2c   :  { %439 = vmatpush.msrb.mxu2 %v982_v47  ;;  %476 = vmatpush.msra.mxu0 %v1003_v54  ;;  %v1075_v13 = vld [vmem:[#allocation10 + $0x8] sm:$0xff]  ;;  %v1078_v14 = vld [vmem:[#allocation10 + $0x120] sm:$0xff]  ;;  %v1084_v17 = vld [vmem:[#allocation10 + $0x118] sm:$0xff] }
  0x2d   :  { %456 = vmatpush.msra.mxu3 %v969_v42  ;;  %421 = vmatpush.msra.mxu1 %v991_v50  ;;  %v334_v16 = vld [vmem:[#allocation10] sm:$0xff]  ;;  %v1088_v18 = vld [vmem:[#allocation10 + $0x278] sm:$0xff]  ;;  %v351_v19 = vld [vmem:[#allocation10 + $0x88] sm:$0xff] }
  0x2e   :  { %440 = vmatpush.msrb.mxu2 %v993_v51  ;;  %477 = vmatpush.msra.mxu0 %v1024_v60  ;;  %v1091_v20 = vld [vmem:[#allocation10 + $0x110] sm:$0xff]  ;;  %v350_v22 = vld [vmem:[#allocation10 + $0x80] sm:$0xff]  ;;  %v1097_v23 = vld [vmem:[#allocation10 + $0x108] sm:$0xff] }
  0x2f   :  { %457 = vmatpush.msra.mxu3 %v978_v45  ;;  %699 = vmatmul.msk.bf16.vlgmr.msrb.gmra.mxu0 %vm160_vm0, %v931_v27  ;;  %v1093_v21 = vld [vmem:[#allocation10 + $0x270] sm:$0xff]  ;;  %v1099_v24 = vld [vmem:[#allocation10 + $0x268] sm:$0xff]  ;;  %v1103_v25 = vld [vmem:[#allocation10 + $0x100] sm:$0xff] }
  0x30   :  { %422 = vmatpush.msra.mxu1 %v1005_v55  ;;  %698 = vmatmul.msk.bf16.vlgmr.msrb.gmra.mxu3 %vm160_vm0, %v931_v27  ;;  %v1105_v26 = vld [vmem:[#allocation10 + $0x260] sm:$0xff]  ;;  %v1110_v27 = vld [vmem:[#allocation10 + $0x258] sm:$0xff]  ;;  %v1116_v28 = vld [vmem:[#allocation10 + $0x250] sm:$0xff] }
  0x31   :  { %458 = vmatpush.msra.mxu3 %v989_v49  ;;  %441 = vmatpush.msrb.mxu2 %v1011_v56  ;;  %v1148_v30 = vld [vmem:[#allocation10 + $0x240] sm:$0xff]  ;;  %v1151_v31 = vld [vmem:[#allocation10 + $0x1b8] sm:$0xff] }
  0x32   :  { %423 = vmatpush.msra.mxu1 %v1013_v57  ;;  %478 = vmatpush.msra.mxu0 %v1037_v0 }
  0x33   :  { %459 = vmatpush.msra.mxu3 %v1001_v53  ;;  %442 = vmatpush.msrb.mxu2 %v1022_v59 }
  0x34   :  { %424 = vmatpush.msra.mxu1 %v1028_v61  ;;  %479 = vmatpush.msra.mxu0 %v1049_v4 }
  0x35   :  { %460 = vmatpush.msra.mxu3 %v1016_v58  ;;  %443 = vmatpush.msrb.mxu2 %v1034_v63 }
  0x36   :  { %425 = vmatpush.msra.mxu1 %v1039_v1  ;;  %480 = vmatpush.msra.mxu0 %v1061_v8 }
  0x37   :  { %461 = vmatpush.msra.mxu3 %v1031_v62  ;;  %444 = vmatpush.msrb.mxu2 %v1046_v3 }
  0x38   :  { %426 = vmatpush.msra.mxu1 %v1051_v5  ;;  %481 = vmatpush.msra.mxu0 %v1073_v12 }
  0x39   :  { %462 = vmatpush.msra.mxu3 %v1042_v2  ;;  %445 = vmatpush.msrb.mxu2 %v1058_v7 }
  0x3a   :  { %427 = vmatpush.msra.mxu1 %v1063_v9  ;;  %482 = vmatpush.msra.mxu0 %v1151_v31 }
  0x3b   :  { %463 = vmatpush.msra.mxu3 %v1054_v6  ;;  %446 = vmatpush.msrb.mxu2 %v1070_v11 }
  0x3c   :  { %428 = vmatpush.msra.mxu1 %v1075_v13 }
  0x3d   :  { %464 = vmatpush.msra.mxu3 %v1066_v10  ;;  %447 = vmatpush.msrb.mxu2 %v352_v15 }
  0x3e   :  { %429 = vmatpush.msra.mxu1 %v334_v16 }
  0x3f   :  { %465 = vmatpush.msra.mxu3 %v1078_v14  ;;  %448 = vmatpush.msrb.mxu2 %v351_v19 }
  0x40   :  { %494 = vmatpush.msrb.mxu1 %v1088_v18 }
  0x41   :  { %466 = vmatpush.msra.mxu3 %v1084_v17  ;;  %449 = vmatpush.msrb.mxu2 %v350_v22 }
  0x42   :  { %495 = vmatpush.msrb.mxu1 %v1093_v21 }
  0x43   :  { %467 = vmatpush.msra.mxu3 %v1091_v20  ;;  %514 = vmatpush.msra.mxu2 %v933_v29  ;;  %v1121_v29 = vld [vmem:[#allocation10 + $0x248] sm:$0xff] }
  0x44   :  { %496 = vmatpush.msrb.mxu1 %v1099_v24 }
  0x45   :  { %468 = vmatpush.msra.mxu3 %v1097_v23  ;;  %515 = vmatpush.msra.mxu2 %v935_v32  ;;  %v1154_v32 = vld [vmem:[#allocation10 + $0x238] sm:$0xff] }
  0x46   :  { %497 = vmatpush.msrb.mxu1 %v1105_v26 }
  0x47   :  { %469 = vmatpush.msra.mxu3 %v1103_v25  ;;  %516 = vmatpush.msra.mxu2 %v946_v34  ;;  %v1160_v34 = vld [vmem:[#allocation10 + $0x230] sm:$0xff] }
  0x48   :  { %498 = vmatpush.msrb.mxu1 %v1110_v27 }
  0x49   :  { %534 = vmatpush.msrb.mxu3 %v937_v33  ;;  %517 = vmatpush.msra.mxu2 %v954_v37  ;;  %v1157_v33 = vld [vmem:[#allocation10 + $0x1b0] sm:$0xff]  ;;  %v1166_v37 = vld [vmem:[#allocation10 + $0x228] sm:$0xff] }
  0x4a   :  { %499 = vmatpush.msrb.mxu1 %v1116_v28  ;;  %483 = vmatpush.msra.mxu0 %v1157_v33 }
  0x4b   :  { %535 = vmatpush.msrb.mxu3 %v948_v35  ;;  %518 = vmatpush.msra.mxu2 %v962_v40  ;;  %v1163_v35 = vld [vmem:[#allocation10 + $0x1a8] sm:$0xff]  ;;  %v1172_v40 = vld [vmem:[#allocation10 + $0x220] sm:$0xff] }
  0x4c   :  { %500 = vmatpush.msrb.mxu1 %v1121_v29  ;;  %484 = vmatpush.msra.mxu0 %v1163_v35 }
  0x4d   :  { %536 = vmatpush.msrb.mxu3 %v956_v38  ;;  %519 = vmatpush.msra.mxu2 %v971_v43  ;;  %v1169_v38 = vld [vmem:[#allocation10 + $0x1a0] sm:$0xff]  ;;  %v1178_v43 = vld [vmem:[#allocation10 + $0x218] sm:$0xff] }
  0x4e   :  { %501 = vmatpush.msrb.mxu1 %v1148_v30  ;;  %485 = vmatpush.msra.mxu0 %v1169_v38 }
  0x4f   :  { %537 = vmatpush.msrb.mxu3 %v964_v41  ;;  %520 = vmatpush.msra.mxu2 %v980_v46  ;;  %v1175_v41 = vld [vmem:[#allocation10 + $0x198] sm:$0xff]  ;;  %v1184_v46 = vld [vmem:[#allocation10 + $0x210] sm:$0xff] }
  0x50   :  { %502 = vmatpush.msrb.mxu1 %v1154_v32  ;;  %486 = vmatpush.msra.mxu0 %v1175_v41 }
  0x51   :  { %538 = vmatpush.msrb.mxu3 %v973_v44  ;;  %521 = vmatpush.msra.mxu2 %v991_v50  ;;  %v1181_v44 = vld [vmem:[#allocation10 + $0x190] sm:$0xff]  ;;  %v1190_v50 = vld [vmem:[#allocation10 + $0x208] sm:$0xff] }
  0x52   :  { %503 = vmatpush.msrb.mxu1 %v1160_v34  ;;  %487 = vmatpush.msra.mxu0 %v1181_v44 }
  0x53   :  { %539 = vmatpush.msrb.mxu3 %v982_v47  ;;  %522 = vmatpush.msra.mxu2 %v1005_v55  ;;  %v1187_v47 = vld [vmem:[#allocation10 + $0x188] sm:$0xff]  ;;  %v1196_v55 = vld [vmem:[#allocation10 + $0x200] sm:$0xff] }
  0x54   :  { %504 = vmatpush.msrb.mxu1 %v1166_v37  ;;  %488 = vmatpush.msra.mxu0 %v1187_v47 }
  0x55   :  { %540 = vmatpush.msrb.mxu3 %v993_v51  ;;  %523 = vmatpush.msra.mxu2 %v1013_v57  ;;  %v1193_v51 = vld [vmem:[#allocation10 + $0x180] sm:$0xff] }
  0x56   :  { %505 = vmatpush.msrb.mxu1 %v1172_v40  ;;  %489 = vmatpush.msra.mxu0 %v1193_v51 }
  0x57   :  { %541 = vmatpush.msrb.mxu3 %v1011_v56  ;;  %524 = vmatpush.msra.mxu2 %v1028_v61  ;;  %v1204_v56 = vld [vmem:[#allocation9] sm:$0x1f] }
  0x58   :  { %506 = vmatpush.msrb.mxu1 %v1178_v43  ;;  %554 = vmatpush.msrb.mxu0 %v952_v36  ;;  %v98_v57 = vperm.slane %v1204_v56, 0 }
  0x59   :  { %542 = vmatpush.msrb.mxu3 %v1022_v59  ;;  %525 = vmatpush.msra.mxu2 %v1039_v1 }
  0x5a   :  { %507 = vmatpush.msrb.mxu1 %v1184_v46  ;;  %555 = vmatpush.msrb.mxu0 %v960_v39 }
  0x5b   :  { %543 = vmatpush.msrb.mxu3 %v1034_v63  ;;  %526 = vmatpush.msra.mxu2 %v1051_v5 }
  0x5c   :  { %508 = vmatpush.msrb.mxu1 %v1190_v50  ;;  %556 = vmatpush.msrb.mxu0 %v969_v42  ;;  %v99_v42 = vperm.slane %v1204_v56, 1 }
  0x5d   :  { %544 = vmatpush.msrb.mxu3 %v1046_v3  ;;  %527 = vmatpush.msra.mxu2 %v1063_v9 }
  0x5e   :  { %509 = vmatpush.msrb.mxu1 %v1196_v55  ;;  %557 = vmatpush.msrb.mxu0 %v978_v45  ;;  %v100_v45 = vperm.slane %v1204_v56, 2 }
  0x5f   :  { %545 = vmatpush.msrb.mxu3 %v1058_v7  ;;  %528 = vmatpush.msra.mxu2 %v1075_v13 }
  0x60   :  { %558 = vmatpush.msrb.mxu0 %v989_v49 }
  0x61   :  { %546 = vmatpush.msrb.mxu3 %v1070_v11  ;;  %529 = vmatpush.msra.mxu2 %v334_v16  ;;  %v102_v16 = vperm.slane %v1204_v56, 4 }
  0x62   :  { %559 = vmatpush.msrb.mxu0 %v1001_v53 }
  0x63   :  { %547 = vmatpush.msrb.mxu3 %v352_v15 }
  0x64   :  { %560 = vmatpush.msrb.mxu0 %v1016_v58 }
  0x65   :  { %548 = vmatpush.msrb.mxu3 %v351_v19 }
  0x66   :  { %561 = vmatpush.msrb.mxu0 %v1031_v62 }
  0x67   :  { %549 = vmatpush.msrb.mxu3 %v350_v22 }
  0x68   :  { %562 = vmatpush.msrb.mxu0 %v1042_v2 }
  0x6a   :  { %563 = vmatpush.msrb.mxu0 %v1054_v6 }
  0x6c   :  { %564 = vmatpush.msrb.mxu0 %v1066_v10 }
  0x6e   :  { %565 = vmatpush.msrb.mxu0 %v1078_v14 }
  0x70   :  { %566 = vmatpush.msrb.mxu0 %v1084_v17 }
  0x72   :  { %567 = vmatpush.msrb.mxu0 %v1091_v20 }
  0x74   :  { %568 = vmatpush.msrb.mxu0 %v1097_v23 }
  0x76   :  { %569 = vmatpush.msrb.mxu0 %v1103_v25 }
  0x9c   :  { %v173_v59 = vpop.f32.mrf.mxu0 }
  0x9d   :  { %v174_v36 = vadd.f32 %v173_v59, %v98_v57 }
  0x9f   :  { %v1211_v39 = vmax.f32 %v174_v36, 0.0 }
  0xa1   :  { %v299_v49 = vmul.f32 %v1211_v39, %v1211_v39  ;;  %v269_v53 = vrot.slane %v1211_v39, 4 }
  0xa3   :  { %v186_v58 = vpop.f32.mrf.mxu3  ;;  %v270_v62 = vadd.f32 %v269_v53, %v1211_v39  ;;  %v304_v3 = vrot.slane %v299_v49, 4 }
  0xa4   :  { %v199_v61 = vpop.f32.mrf.mxu2  ;;  %v187_v63 = vadd.f32 %v186_v58, %v99_v42  ;;  %v175_v2 = vpop.f32.mrf.mxu0 }
  0xa5   :  { %v200_v1 = vadd.f32 %v199_v61, %v100_v45  ;;  %v271_v5 = vrot.slane %v270_v62, 2  ;;  %v305_v14 = vadd.f32 %v304_v3, %v299_v49  ;;  %v237_v49 = vstv %s1231_s19 }
  0xa6   :  { %v1226_v6 = vmax.f32 %v187_v63, 0.0  ;;  %vm1269_vm1 = vcmp.eq.s32.totalorder %v237_v49, 1 }
  0xa7   :  { %v1228_v7 = vmax.f32 %v200_v1, 0.0  ;;  %v272_v9 = vadd.f32 %v271_v5, %v270_v62  ;;  %v306_v58 = vrot.slane %v305_v14, 2 }
  0xa8   :  { %v275_v10 = vrot.slane %v1226_v6, 4  ;;  %v300_v11 = vmul.f32 %v1226_v6, %v1226_v6 }
  0xa9   :  { %v281_v13 = vrot.slane %v1228_v7, 4  ;;  %v273_v15 = vrot.slane %v272_v9, 1  ;;  %v301_v5 = vmul.f32 %v1228_v7, %v1228_v7 }
  0xaa   :  { %v310_v17 = vrot.slane %v300_v11, 4  ;;  %v276_v20 = vadd.f32 %v275_v10, %v1226_v6  ;;  %v307_v10 = vadd.f32 %v306_v58, %v305_v14 }
  0xab   :  { %v282_v19 = vadd.f32 %v281_v13, %v1228_v7  ;;  %v188_v22 = vpop.f32.mrf.mxu3  ;;  %v274_v57 = vadd.f32 %v273_v15, %v272_v9  ;;  %v316_v14 = vrot.slane %v301_v5, 4 }
  0xac   :  { %v201_v59 = vpop.f32.mrf.mxu2  ;;  %v311_v23 = vadd.f32 %v310_v17, %v300_v11  ;;  %v225_v42 = vpop.f32.mrf.mxu0  ;;  %v277_v45 = vrot.slane %v276_v20, 2  ;;  %v242_v11 = vstv %s241_s28  ;;  %v247_v17 = vstv %s1261_s7 }
  0xad   :  { %v283_v36 = vrot.slane %v282_v19, 2  ;;  %430 = vmatmul.f32.vlgmr.msra.gmra.mxu1 %v274_v57  ;;  %v226_v53 = vadd.f32 %v225_v42, %v102_v16  ;;  %v252_v22 = vstv %s1267_s10  ;;  %vm243_vm2 = vcmp.eq.s32.totalorder %v242_v11, 1 }
  0xae   :  { %574 = vmatpush.msra.mxu1 %v985_v48  ;;  %v278_v25 = vadd.f32 %v277_v45, %v276_v20  ;;  %v312_v62 = vrot.slane %v311_v23, 2  ;;  %v101_v48 = vperm.slane %v1204_v56, 3  ;;  %vm1286_vm3 = vcmp.eq.s32.totalorder %v247_v17, 1 }
  0xaf   :  { %v284_v61 = vadd.f32 %v283_v36, %v282_v19  ;;  %v233_v63 = vmax.f32 %v226_v53, 0.0  ;;  %vm253_vm4 = vcmp.eq.s32.totalorder %v252_v22, 1  ;;  %v317_v49 = vadd.f32 %v316_v14, %v301_v5 }
  0xb0   :  { %575 = vmatpush.msra.mxu1 %v997_v52  ;;  %v279_v2 = vrot.slane %v278_v25, 1  ;;  %v313_v16 = vadd.f32 %v312_v62, %v311_v23  ;;  %v239_v52 = vsel %vm1269_vm1, %v1226_v6, %v1211_v39 }
  0xb1   :  { %v285_v3 = vrot.slane %v284_v61, 1  ;;  %v293_v9 = vrot.slane %v233_v63, 4  ;;  %v244_v6 = vsel %vm243_vm2, %v1228_v7, %v239_v52  ;;  %v303_v62 = vmul.f32 %v233_v63, %v233_v63 }
  0xb2   :  { %576 = vmatpush.msra.mxu1 %v1003_v54  ;;  %v280_v13 = vadd.f32 %v279_v2, %v278_v25  ;;  %v308_v54 = vrot.slane %v307_v10, 1  ;;  %v314_v42 = vrot.slane %v313_v16, 1 }
  0xb3   :  { %v286_v15 = vadd.f32 %v285_v3, %v284_v61  ;;  %v212_v19 = vpop.f32.mrf.mxu3  ;;  %v294_v20 = vadd.f32 %v293_v9, %v233_v63 }
  0xb4   :  { %v213_v56 = vadd.f32 %v212_v19, %v101_v48  ;;  %450 = vmatmul.f32.vlgmr.msrb.gmra.mxu2 %v280_v13  ;;  %v227_v57 = vpop.f32.mrf.mxu0  ;;  %577 = vmatpush.msra.mxu1 %v1024_v60  ;;  %v309_v53 = vadd.f32 %v308_v54, %v307_v10 }
  0xb5   :  { %470 = vmatmul.f32.vlgmr.msra.gmra.mxu3 %v286_v15  ;;  %594 = vmatpush.msrb.mxu2 %v1088_v18  ;;  %v295_v59 = vrot.slane %v294_v20, 2 }
  0xb6   :  { %v232_v36 = vmax.f32 %v213_v56, 0.0  ;;  %578 = vmatpush.msra.mxu1 %v1037_v0 }
  0xb7   :  { %595 = vmatpush.msrb.mxu2 %v1093_v21  ;;  %v296_v39 = vadd.f32 %v295_v59, %v294_v20  ;;  %v315_v21 = vadd.f32 %v314_v42, %v313_v16 }
  0xb8   :  { %v287_v45 = vrot.slane %v232_v36, 4  ;;  %v302_v60 = vmul.f32 %v232_v36, %v232_v36  ;;  %v249_v18 = vsel %vm1286_vm3, %v232_v36, %v244_v6  ;;  %579 = vmatpush.msra.mxu1 %v1049_v4  ;;  %v328_v4 = vrot.slane %v303_v62, 4 }
  0xb9   :  { %596 = vmatpush.msrb.mxu2 %v1099_v24  ;;  %v297_v58 = vrot.slane %v296_v39, 1  ;;  %v254_v25 = vsel %vm253_vm4, %v233_v63, %v249_v18  ;;  %v318_v63 = vrot.slane %v317_v49, 2 }
  0xba   :  { %v288_v61 = vadd.f32 %v287_v45, %v232_v36  ;;  %v322_v0 = vrot.slane %v302_v60, 4  ;;  %255 = vst [vmem:[#allocation12] sm:$0xff] %v254_v25  ;;  %580 = vmatpush.msra.mxu1 %v1061_v8  ;;  %v329_v3 = vadd.f32 %v328_v4, %v303_v62 }
  0xbb   :  { %597 = vmatpush.msrb.mxu2 %v1105_v26  ;;  %v214_v7 = vpop.f32.mrf.mxu3  ;;  %v298_v1 = vadd.f32 %v297_v58, %v296_v39  ;;  %v319_v9 = vadd.f32 %v318_v63, %v317_v49  ;;  %630 = dma.vmem_to_hbm [thread:$0]  %s626_s13, 128, %s628_s2, [#allocation6]  }
  0xbc   :  { %v289_v48 = vrot.slane %v288_v61, 2  ;;  %v323_v2 = vadd.f32 %v322_v0, %v302_v60  ;;  %530 = vmatmul.f32.vlgmr.msra.gmra.mxu2 %v309_v53  ;;  %581 = vmatpush.msra.mxu1 %v1073_v12 }
  0xbd   :  { %550 = vmatmul.f32.vlgmr.msrb.gmra.mxu3 %v315_v21  ;;  %598 = vmatpush.msrb.mxu2 %v1110_v27  ;;  %v320_v27 = vrot.slane %v319_v9, 1 }
  0xbe   :  { %v290_v24 = vadd.f32 %v289_v48, %v288_v61  ;;  %510 = vmatmul.f32.vlgmr.msrb.gmra.mxu1 %v298_v1  ;;  %v324_v26 = vrot.slane %v323_v2, 2 }
  0xbf   :  { %582 = vmatpush.msra.mxu1 %v1151_v31  ;;  %599 = vmatpush.msrb.mxu2 %v1116_v28  ;;  %v330_v28 = vrot.slane %v329_v3, 2  ;;  %v321_v31 = vadd.f32 %v320_v27, %v319_v9 }
  0xc0   :  { %v291_v8 = vrot.slane %v290_v24, 1  ;;  %v325_v12 = vadd.f32 %v324_v26, %v323_v2 }
  0xc1   :  { %583 = vmatpush.msra.mxu1 %v1157_v33  ;;  %600 = vmatpush.msrb.mxu2 %v1121_v29  ;;  %v331_v33 = vadd.f32 %v330_v28, %v329_v3 }
  0xc2   :  { %v292_v5 = vadd.f32 %v291_v8, %v290_v24  ;;  %v326_v29 = vrot.slane %v325_v12, 1 }
  0xc3   :  { %584 = vmatpush.msra.mxu1 %v1163_v35  ;;  %601 = vmatpush.msrb.mxu2 %v1148_v30 }
  0xc4   :  { %490 = vmatmul.f32.vlgmr.msra.gmra.mxu0 %v292_v5  ;;  %v327_v30 = vadd.f32 %v326_v29, %v325_v12 }
  0xc5   :  { %585 = vmatpush.msra.mxu1 %v1169_v38  ;;  %602 = vmatpush.msrb.mxu2 %v1154_v32  ;;  %v332_v32 = vrot.slane %v331_v33, 1 }
  0xc7   :  { %586 = vmatpush.msra.mxu1 %v1175_v41  ;;  %603 = vmatpush.msrb.mxu2 %v1160_v34  ;;  %v333_v34 = vadd.f32 %v332_v32, %v331_v33 }
  0xc9   :  { %587 = vmatpush.msra.mxu1 %v1181_v44  ;;  %604 = vmatpush.msrb.mxu2 %v1166_v37 }
  0xcb   :  { %588 = vmatpush.msra.mxu1 %v1187_v47  ;;  %605 = vmatpush.msrb.mxu2 %v1172_v40 }
  0xcc   :  { %570 = vmatmul.f32.vlgmr.msrb.gmra.mxu0 %v321_v31 }
  0xcd   :  { %589 = vmatpush.msra.mxu1 %v1193_v51  ;;  %606 = vmatpush.msrb.mxu2 %v1178_v43 }
  0xce   :  { %590 = vmatmul.f32.vlgmr.msra.gmra.mxu1 %v327_v30 }
  0xcf   :  { %607 = vmatpush.msrb.mxu2 %v1184_v46 }
  0xd1   :  { %608 = vmatpush.msrb.mxu2 %v1190_v50 }
  0xd3   :  { %609 = vmatpush.msrb.mxu2 %v1196_v55 }
  0xd4   :  { %610 = vmatmul.f32.vlgmr.msrb.gmra.mxu2 %v333_v34 }
 0x12a   :  { %v431_v35 = vpop.f32.mrf.mxu1 }
 0x137   :  { %v451_v37 = vpop.f32.mrf.mxu2 }
 0x138   :  { %v471_v38 = vpop.f32.mrf.mxu3  ;;  %v452_v47 = vadd.f32 %v451_v37, %v431_v35 }
 0x13a   :  { %v472_v10 = vadd.f32 %v471_v38, %v452_v47 }
 0x13b   :  { %v511_v41 = vpop.f32.mrf.mxu1 }
 0x13f   :  { %v531_v43 = vpop.f32.mrf.mxu2 }
 0x140   :  { %v551_v44 = vpop.f32.mrf.mxu3 }
 0x141   :  { %v491_v40 = vpop.f32.mrf.mxu0  ;;  %v552_v50 = vadd.f32 %v551_v44, %v531_v43 }
 0x142   :  { %v492_v11 = vadd.f32 %v491_v40, %v472_v10 }
 0x144   :  { %v512_v17 = vadd.f32 %v511_v41, %v492_v11 }
 0x149   :  { %v571_v46 = vpop.f32.mrf.mxu0 }
 0x14a   :  { %v572_v51 = vadd.f32 %v571_v46, %v552_v50 }
 0x14b   :  { %v591_v55 = vpop.f32.mrf.mxu1 }
 0x14c   :  { %v592_v13 = vadd.f32 %v591_v55, %v572_v51 }
 0x157   :  { %v611_v15 = vpop.f32.mrf.mxu2 }
 0x158   :  { %v612_v16 = vadd.f32 %v611_v15, %v592_v13 }
 0x15a   :  { %v615_v19 = vrot.slane %v612_v16, 7 }
 0x15c   :  { %v618_v20 = vsel %vm617_vm5, %v512_v17, %v615_v19 }
 0x15d   :  { %619 = vst [vmem:[#allocation13] sm:$0x3] %v618_v20 }
 0x15e   :  { %641 = dma.vmem_to_hbm [thread:$0]  %s637_s14, 32, %s639_s16, [#allocation14]  }
 0x15f   :  { %870 = dma.done.wait [#allocation6], 128  }
 0x160   :  { %871 = vsyncadd [#allocation6], 4294967168 }
 0x161   :  { %872 = dma.done.wait [#allocation14], 32  }
 0x162   :  { %873 = vsyncadd [#allocation14], 4294967264 }
 0x163   :  { %650 = vsyncpa [#allocation5], 1 }
 0x164   :  { %651 = vsyncpa [#allocation8], 1 }
 0x165   :  { %652 = vsyncpa [#allocation11], 1 }
 0x166   :  { %653 = vsyncpa [#allocation6], 1 }
 0x167   :  { %654 = vsyncpa [#allocation14], 1 }

</bundles_post_ra>
